<compile_context>
chip_gen: v7x
topology: tpu7x:2x2x1
jax: 0.10.0
libtpu: 0.0.40
codegen_flags: <defaults>
</compile_context>

<pallas_src>
import math

import jax
import jax.numpy as jnp
from jax.experimental import pallas as pl
from jax.experimental.pallas import tpu as pltpu

K_IN = 28 * 28      # 784 (no contraction padding; full-extent last-dim block)
H1 = 512
H2 = 256
N_OUT = 10
OUT_PAD = 128       # lane-dense output block
TB_TARGET = 512     # batch tile for large B (bf16 x block ~0.8 MiB)


def _round_up(x, m):
    return (x + m - 1) // m * m


def mlp_kernel(x_ref, w1_ref, b1_ref, w2_ref, b2_ref, w3_ref, b3_ref, o_ref):
    # x: (TB, 784) bf16; weights bf16; biases f32; MXU accumulates in f32.
    x = x_ref[...]

    # Layer 1: (TB, 784) @ (784, 512) + (1, 512) -> ReLU
    h1 = jnp.dot(x, w1_ref[...], preferred_element_type=jnp.float32)
    h1 = jnp.maximum(h1 + b1_ref[...], 0.0).astype(jnp.bfloat16)

    # Layer 2: (TB, 512) @ (512, 256) + (1, 256) -> ReLU
    h2 = jnp.dot(h1, w2_ref[...], preferred_element_type=jnp.float32)
    h2 = jnp.maximum(h2 + b2_ref[...], 0.0).astype(jnp.bfloat16)

    # Layer 3: (TB, 256) @ (256, 128) + (1, 128); cols 10..127 are zero-padded.
    out = jnp.dot(h2, w3_ref[...], preferred_element_type=jnp.float32) + b3_ref[...]
    o_ref[...] = out.astype(o_ref.dtype)


def my_model_forward(x_nchw, params):
    """x_nchw: (B, 1, 28, 28) raw pixels. Returns logits (B, 10) in f32.
    (Normalization is pre-folded into layer-1 params; see init_params.)"""
    B = x_nchw.shape[0]
    w1, b1, w2, b2, w3, b3 = params  # w*: bf16 (in, out); b*: f32 (1, out)

    # Batch tiling:
    #  * tiny B       -> single 8-row tile
    #  * 8 < B <= 1024 -> exactly two tiles (both TensorCores on v7x)
    #  * large B      -> TB_TARGET tiles, grid >= 3
    if B <= 8:
        TB = _round_up(B, 8)
        Bp = TB
    elif B <= 2 * TB_TARGET:
        TB = _round_up((B + 1) // 2, 8)
        Bp = 2 * TB
    else:
        TB = TB_TARGET
        Bp = _round_up(B, TB)

    # Flatten + cast to bf16 + batch-only pad: x crosses HBM once before the
    # kernel (fuses under jit); no K-dim padding, no f32 intermediate.
    x_flat = x_nchw.reshape(B, K_IN).astype(jnp.bfloat16)
    if Bp != B:
        x_flat = jnp.pad(x_flat, ((0, Bp - B), (0, 0)))

    out = pl.pallas_call(
        mlp_kernel,
        out_shape=jax.ShapeDtypeStruct((Bp, OUT_PAD), jnp.float32),
        grid=(Bp // TB,),
        in_specs=[
            pl.BlockSpec((TB, K_IN), lambda i: (i, 0)),    # x: tiled over batch
            pl.BlockSpec((K_IN, H1), lambda i: (0, 0)),    # weights/biases stay
            pl.BlockSpec((1, H1), lambda i: (0, 0)),       # resident in VMEM
            pl.BlockSpec((H1, H2), lambda i: (0, 0)),
            pl.BlockSpec((1, H2), lambda i: (0, 0)),
            pl.BlockSpec((H2, OUT_PAD), lambda i: (0, 0)),
            pl.BlockSpec((1, OUT_PAD), lambda i: (0, 0)),
        ],
        out_specs=pl.BlockSpec((TB, OUT_PAD), lambda i: (i, 0)),
        compiler_params=pltpu.CompilerParams(
            dimension_semantics=("parallel",),   # megacore sharding on v7x
            vmem_limit_bytes=32 << 20,
        ),
    )(x_flat, w1, b1, w2, b2, w3, b3)

    return out[:B, :N_OUT]


def init_params(key, *, fold_normalize=True, mean=0.1307, std=0.3081):
    """PyTorch-style init U(-1/sqrt(fan_in), 1/sqrt(fan_in)).
    Returns kernel-ready params: weights (in, out) in bf16 (w3/b3 zero-padded
    to 128 output cols), biases in f32. If fold_normalize, the torchvision
    Normalize((mean,), (std,)) preprocessing is folded into w1/b1 in f32
    before the bf16 cast (exact same math, zero in-kernel cost)."""
    dims = [(K_IN, H1), (H1, H2), (H2, N_OUT)]
    raw = []
    for fan_in, fan_out in dims:
        key, kw, kb = jax.random.split(key, 3)
        bound = 1.0 / math.sqrt(fan_in)
        w = jax.random.uniform(kw, (fan_in, fan_out), jnp.float32, -bound, bound)
        b = jax.random.uniform(kb, (1, fan_out), jnp.float32, -bound, bound)
        raw.append((w, b))
    (w1, b1), (w2, b2), (w3, b3) = raw

    if fold_normalize:
        inv_std = 1.0 / std
        b1 = b1 - (mean * inv_std) * jnp.sum(w1, axis=0, keepdims=True)
        w1 = w1 * inv_std

    w3 = jnp.pad(w3, ((0, 0), (0, OUT_PAD - N_OUT)))   # padded cols contribute 0
    b3 = jnp.pad(b3, ((0, 0), (0, OUT_PAD - N_OUT)))
    return (w1.astype(jnp.bfloat16), b1,
            w2.astype(jnp.bfloat16), b2,
            w3.astype(jnp.bfloat16), b3)


def _reference(x_nchw, params):
    """Pure-JAX reference mirroring the kernel's bf16 quantization, using the
    same (normalization-folded) params."""
    w1, b1, w2, b2, w3, b3 = params
    B = x_nchw.shape[0]
    xb = x_nchw.reshape(B, K_IN).astype(jnp.bfloat16).astype(jnp.float32)
    h1 = jnp.maximum(xb @ w1.astype(jnp.float32) + b1, 0.0)
    h1 = h1.astype(jnp.bfloat16).astype(jnp.float32)
    h2 = jnp.maximum(h1 @ w2.astype(jnp.float32) + b2, 0.0)
    h2 = h2.astype(jnp.bfloat16).astype(jnp.float32)
    out = h2 @ w3.astype(jnp.float32) + b3
    return out[:, :N_OUT]


if __name__ == "__main__":
    key = jax.random.PRNGKey(0)
    kp, kx, kx2 = jax.random.split(key, 3)

    params = init_params(kp)
    fwd = jax.jit(my_model_forward)

    # Small deterministic "image" batch: (2, 1, 28, 28), raw pixels in [0, 1];
    # normalization is folded into the layer-1 parameters.
    x = jax.random.uniform(kx, (2, 1, 28, 28), jnp.float32)
    logits = jax.block_until_ready(fwd(x, params))
    assert logits.shape == (2, N_OUT)
    ref = _reference(x, params)
    assert jnp.allclose(logits, ref, atol=2e-2, rtol=2e-2)

    # Secondary check: a batch that exercises the two-tile grid
    # (B=300 -> two TB=152 tiles; both TensorCores on v7x).
    xb = jax.random.uniform(kx2, (300, 1, 28, 28), jnp.float32)
    logits_b = jax.block_until_ready(fwd(xb, params))
    ref_b = _reference(xb, params)
    assert logits_b.shape == (300, N_OUT)
    assert jnp.allclose(logits_b, ref_b, atol=2e-2, rtol=2e-2)

    print("KERNEL_OK")
</pallas_src>

<mosaic_0001>
module attributes {stable_mosaic.version = 11 : i64} {
  func.func @mlp_kernel(%arg0: i32, %arg1: memref<8x784xbf16, #tpu.memory_space<vmem>>, %arg2: memref<784x512xbf16, #tpu.memory_space<vmem>>, %arg3: memref<1x512xf32, #tpu.memory_space<vmem>>, %arg4: memref<512x256xbf16, #tpu.memory_space<vmem>>, %arg5: memref<1x256xf32, #tpu.memory_space<vmem>>, %arg6: memref<256x128xbf16, #tpu.memory_space<vmem>>, %arg7: memref<1x128xf32, #tpu.memory_space<vmem>>, %arg8: memref<8x128xf32, #tpu.memory_space<vmem>>) attributes {dimension_semantics = [#tpu.dimension_semantics<parallel>], iteration_bounds = array<i64: 1>, scalar_prefetch = 0 : i64, scratch_operands = 0 : i64, tpu.core_type = #tpu.core_type<tc>, window_params = [{transform_indices = @transform_0, window_bounds = array<i64: 8, 784>}, {pipeline_mode = #tpu.pipeline_mode<synchronous>, transform_indices = @transform_1, window_bounds = array<i64: 784, 512>}, {pipeline_mode = #tpu.pipeline_mode<synchronous>, transform_indices = @transform_2, window_bounds = array<i64: 1, 512>}, {pipeline_mode = #tpu.pipeline_mode<synchronous>, transform_indices = @transform_3, window_bounds = array<i64: 512, 256>}, {pipeline_mode = #tpu.pipeline_mode<synchronous>, transform_indices = @transform_4, window_bounds = array<i64: 1, 256>}, {pipeline_mode = #tpu.pipeline_mode<synchronous>, transform_indices = @transform_5, window_bounds = array<i64: 256, 128>}, {pipeline_mode = #tpu.pipeline_mode<synchronous>, transform_indices = @transform_6, window_bounds = array<i64: 1, 128>}, {transform_indices = @transform_7, window_bounds = array<i64: 8, 128>}]} {
    %c0 = arith.constant 0 : index
    %c0_0 = arith.constant 0 : index
    %0 = vector.load %arg1[%c0, %c0_0] : memref<8x784xbf16, #tpu.memory_space<vmem>>, vector<8x784xbf16>
    %c0_1 = arith.constant 0 : index
    %c0_2 = arith.constant 0 : index
    %1 = vector.load %arg2[%c0_1, %c0_2] : memref<784x512xbf16, #tpu.memory_space<vmem>>, vector<784x512xbf16>
    %cst = arith.constant dense<0.000000e+00> : vector<8x512xf32>
    %2 = tpu.matmul %0, %1, %cst {dimension_numbers = #tpu.dot_dimension_numbers<[1], [0], [0], [1], [0, 0, 1, 1], [], []>} : vector<8x784xbf16>, vector<784x512xbf16>, vector<8x512xf32> -> vector<8x512xf32>
    %c0_3 = arith.constant 0 : index
    %c0_4 = arith.constant 0 : index
    %3 = vector.load %arg3[%c0_3, %c0_4] : memref<1x512xf32, #tpu.memory_space<vmem>>, vector<1x512xf32>
    %4 = vector.broadcast %3 : vector<1x512xf32> to vector<8x512xf32>
    %5 = arith.addf %2, %4 : vector<8x512xf32>
    %cst_5 = arith.constant 0.000000e+00 : f32
    %6 = vector.broadcast %cst_5 : f32 to vector<8x512xf32>
    %7 = arith.maximumf %5, %6 : vector<8x512xf32>
    %8 = arith.truncf %7 : vector<8x512xf32> to vector<8x512xbf16>
    %c0_6 = arith.constant 0 : index
    %c0_7 = arith.constant 0 : index
    %9 = vector.load %arg4[%c0_6, %c0_7] : memref<512x256xbf16, #tpu.memory_space<vmem>>, vector<512x256xbf16>
    %cst_8 = arith.constant dense<0.000000e+00> : vector<8x256xf32>
    %10 = tpu.matmul %8, %9, %cst_8 {dimension_numbers = #tpu.dot_dimension_numbers<[1], [0], [0], [1], [0, 0, 1, 1], [], []>} : vector<8x512xbf16>, vector<512x256xbf16>, vector<8x256xf32> -> vector<8x256xf32>
    %c0_9 = arith.constant 0 : index
    %c0_10 = arith.constant 0 : index
    %11 = vector.load %arg5[%c0_9, %c0_10] : memref<1x256xf32, #tpu.memory_space<vmem>>, vector<1x256xf32>
    %12 = vector.broadcast %11 : vector<1x256xf32> to vector<8x256xf32>
    %13 = arith.addf %10, %12 : vector<8x256xf32>
    %cst_11 = arith.constant 0.000000e+00 : f32
    %14 = vector.broadcast %cst_11 : f32 to vector<8x256xf32>
    %15 = arith.maximumf %13, %14 : vector<8x256xf32>
    %16 = arith.truncf %15 : vector<8x256xf32> to vector<8x256xbf16>
    %c0_12 = arith.constant 0 : index
    %c0_13 = arith.constant 0 : index
    %17 = vector.load %arg6[%c0_12, %c0_13] : memref<256x128xbf16, #tpu.memory_space<vmem>>, vector<256x128xbf16>
    %cst_14 = arith.constant dense<0.000000e+00> : vector<8x128xf32>
    %18 = tpu.matmul %16, %17, %cst_14 {dimension_numbers = #tpu.dot_dimension_numbers<[1], [0], [0], [1], [0, 0, 1, 1], [], []>} : vector<8x256xbf16>, vector<256x128xbf16>, vector<8x128xf32> -> vector<8x128xf32>
    %c0_15 = arith.constant 0 : index
    %c0_16 = arith.constant 0 : index
    %19 = vector.load %arg7[%c0_15, %c0_16] : memref<1x128xf32, #tpu.memory_space<vmem>>, vector<1x128xf32>
    %20 = vector.broadcast %19 : vector<1x128xf32> to vector<8x128xf32>
    %21 = arith.addf %18, %20 : vector<8x128xf32>
    %c0_17 = arith.constant 0 : index
    %c0_18 = arith.constant 0 : index
    %22 = vector.load %arg8[%c0_17, %c0_18] : memref<8x128xf32, #tpu.memory_space<vmem>>, vector<8x128xf32>
    tpu.vector_store %arg8[%c0_17, %c0_18], %21 {strides = array<i32>} : memref<8x128xf32, #tpu.memory_space<vmem>>, vector<8x128xf32>,
    return
  }
  func.func @transform_0(%arg0: i32) -> (i32, i32) {
    %c0_i32 = arith.constant 0 : i32
    %c0_i32_0 = arith.constant 0 : i32
    return %arg0, %c0_i32 : i32, i32
  }
  func.func @transform_1(%arg0: i32) -> (i32, i32) {
    %c0_i32 = arith.constant 0 : i32
    %c0_i32_0 = arith.constant 0 : i32
    %c0_i32_1 = arith.constant 0 : i32
    return %c0_i32, %c0_i32_0 : i32, i32
  }
  func.func @transform_2(%arg0: i32) -> (i32, i32) {
    %c0_i32 = arith.constant 0 : i32
    %c0_i32_0 = arith.constant 0 : i32
    %c0_i32_1 = arith.constant 0 : i32
    return %c0_i32, %c0_i32_0 : i32, i32
  }
  func.func @transform_3(%arg0: i32) -> (i32, i32) {
    %c0_i32 = arith.constant 0 : i32
    %c0_i32_0 = arith.constant 0 : i32
    %c0_i32_1 = arith.constant 0 : i32
    return %c0_i32, %c0_i32_0 : i32, i32
  }
  func.func @transform_4(%arg0: i32) -> (i32, i32) {
    %c0_i32 = arith.constant 0 : i32
    %c0_i32_0 = arith.constant 0 : i32
    %c0_i32_1 = arith.constant 0 : i32
    return %c0_i32, %c0_i32_0 : i32, i32
  }
  func.func @transform_5(%arg0: i32) -> (i32, i32) {
    %c0_i32 = arith.constant 0 : i32
    %c0_i32_0 = arith.constant 0 : i32
    %c0_i32_1 = arith.constant 0 : i32
    return %c0_i32, %c0_i32_0 : i32, i32
  }
  func.func @transform_6(%arg0: i32) -> (i32, i32) {
    %c0_i32 = arith.constant 0 : i32
    %c0_i32_0 = arith.constant 0 : i32
    %c0_i32_1 = arith.constant 0 : i32
    return %c0_i32, %c0_i32_0 : i32, i32
  }
  func.func @transform_7(%arg0: i32) -> (i32, i32) {
    %c0_i32 = arith.constant 0 : i32
    %c0_i32_0 = arith.constant 0 : i32
    return %arg0, %c0_i32 : i32, i32
  }
}

</mosaic_0001>

<bundles_post_ra>
// kernel: my_model_forward.1
= control target key start
LH: loop header
LB: loop body
LE: loop exit
PB: predicated region body
PF: predicated region fallthrough
CT: control target
= control target key end

     0   :  { %12 = vsyncpa [#allocation3], 0  ;;  %s3290_s0 = inlined_call_operand.vmem [shape: bf16[8,784], index: 0, kind: input, shape index: {}]   ;;  %s3291_s1 = inlined_call_operand.hbm [shape: bf16[784,512], index: 1, kind: input, shape index: {}]   ;;  %s3292_s2 = inlined_call_operand.vmem [shape: f32[1,512], index: 2, kind: input, shape index: {}]   ;;  %s3293_s3 = inlined_call_operand.hbm [shape: bf16[512,256], index: 3, kind: input, shape index: {}]   ;;  %s3294_s4 = inlined_call_operand.vmem [shape: f32[1,256], index: 4, kind: input, shape index: {}]   ;;  %s3295_s5 = inlined_call_operand.vmem [shape: bf16[256,128], index: 5, kind: input, shape index: {}]   ;;  %s3296_s6 = inlined_call_operand.vmem [shape: f32[1,128], index: 6, kind: input, shape index: {}]   ;;  %s3297_s7 = inlined_call_operand.vmem [shape: f32[8,128], index: 7, kind: output, shape index: {}]  }
   0x1   :  { %13 = vsyncpa [#allocation5], 0  ;;  %s3091_s24 = smov [#allocation2]   ;;  %s3043_s28 = scalar_lea.hbm %s3291_s1, 25088 }
   0x2   :  { %s21_s25 = sshll.u32 %s3091_s24, 4  ;;  %p3044_p0 = scmp.ne.s32.totalorder %s3291_s1, %s3043_s28  ;;  %s22_s25 = int_to_ptr.vmem [resolvable:$true] %s21_s25 }
   0x3   :  { %p3047_p1 = scmp.lt.u32.totalorder %s3043_s28, %s3291_s1 }
   0x5   :  { %p3049_p2 = pnand %p3047_p1, %p3044_p0 }
   0x7   :  { %3052 = shalt.err (!%p3049_p2)
}
   0x8   :  { %s3053_s10 = scalar_lea.vmem %s22_s25, 25088  ;;  %p3058_p4 = scmp.lt.s32.totalorder %s22_s25, %s22_s25 }
   0x9   :  { %p3054_p3 = scmp.ne.s32.totalorder %s22_s25, %s3053_s10  ;;  %p3059_p5 = scmp.lt.s32.totalorder %s3053_s10, %s3053_s10 }
   0xb   :  { %p3060_p6 = por %p3059_p5, %p3058_p4 }
   0xd   :  { %p3061_p7 = pnand %p3060_p6, %p3054_p3 }
   0xf   :  { %3064 = shalt.err (!%p3061_p7)
}
  0x10   :  { %s3092_s11 = smov 256   ;;  %s3093_s12 = smov 16  }
  0x11   :  { %27 = dma.hbm_to_vmem [thread:$0]  %s3291_s1, 25088, %s22_s25, [#allocation3], %s3092_s11, %s3092_s11, %s3093_s12  }
  0x12   :  { %s3094_s15 = smov [#allocation4]   ;;  %s3065_s19 = scalar_lea.hbm %s3293_s3, 8192 }
  0x13   :  { %s35_s16 = sshll.u32 %s3094_s15, 4  ;;  %p3066_p8 = scmp.ne.s32.totalorder %s3293_s3, %s3065_s19  ;;  %s36_s16 = int_to_ptr.vmem [resolvable:$true] %s35_s16 }
  0x14   :  { %p3069_p9 = scmp.lt.u32.totalorder %s3065_s19, %s3293_s3 }
  0x16   :  { %p3071_p10 = pnand %p3069_p9, %p3066_p8 }
  0x18   :  { %3074 = shalt.err (!%p3071_p10)
}
  0x19   :  { %s3075_s24 = scalar_lea.vmem %s36_s16, 8192  ;;  %p3080_p12 = scmp.lt.s32.totalorder %s36_s16, %s36_s16 }
  0x1a   :  { %p3076_p11 = scmp.ne.s32.totalorder %s36_s16, %s3075_s24  ;;  %p3081_p13 = scmp.lt.s32.totalorder %s3075_s24, %s3075_s24 }
  0x1c   :  { %p3082_p0 = por %p3081_p13, %p3080_p12 }
  0x1e   :  { %p3083_p1 = pnand %p3082_p0, %p3076_p11 }
  0x20   :  { %3086 = shalt.err (!%p3083_p1)
}
  0x21   :  { %s3095_s1 = smov 128   ;;  %s3096_s25 = smov 8  }
  0x22   :  { %41 = dma.hbm_to_vmem [thread:$0]  %s3293_s3, 8192, %s36_s16, [#allocation5], %s3095_s1, %s3095_s1, %s3096_s25  }
  0x23   :  { %3087 = dma.done.wait [#allocation3], 25088  }
  0x24   :  { %3088 = vsyncadd [#allocation3], 4294942208 }
  0x25   :  { %3089 = dma.done.wait [#allocation5], 8192  }
  0x26   :  { %3090 = vsyncadd [#allocation5], 4294959104  ;;  %v2630_v0 = vld [vmem:[#allocation2 + $0x4] ss:$16 sps:$4 sm:$0xff]   ;;  %v2634_v2 = vld [vmem:[#allocation2] ss:$16 sps:$4 sm:$0xff]  }
  0x27   :  { %v2632_v1 = vld [vmem:[#allocation2 + $0x204] ss:$16 sps:$4 sm:$0xff]   ;;  %1285 = vmatprep.subr.bf16.mxu1 %v2630_v0  ;;  %v2635_v3 = vld [vmem:[#allocation2 + $0x200] ss:$16 sps:$4 sm:$0xff]   ;;  %v56_v48 = vld [vmem:[%s3290_s0 + $0x8] sm:$0xff]  ;;  %vm1281_vm0 = vcmask 130048  }
  0x28   :  { %1326 = vmatprep.subr.bf16.mxu0 %v2632_v1  ;;  %v2636_v4 = vld [vmem:[#allocation2 + $0x24] ss:$16 sps:$4 sm:$0xff]   ;;  %1286 = vmatpush1.bf16.msra.mxu1 %v2634_v2  ;;  %v2640_v6 = vld [vmem:[#allocation2 + $0x20] ss:$16 sps:$4 sm:$0xff]   ;;  %v3170_v51 = vcombine.high %v56_v48, %v56_v48 }
  0x29   :  { %1327 = vmatpush1.bf16.msra.mxu0 %v2635_v3  ;;  %v2638_v5 = vld [vmem:[#allocation2 + $0x224] ss:$16 sps:$4 sm:$0xff]   ;;  %1287 = vmatprep.subr.bf16.mxu1 %v2636_v4  ;;  %v2641_v7 = vld [vmem:[#allocation2 + $0x220] ss:$16 sps:$4 sm:$0xff]  }
  0x2a   :  { %1328 = vmatprep.subr.bf16.mxu0 %v2638_v5  ;;  %v2642_v8 = vld [vmem:[#allocation2 + $0x44] ss:$16 sps:$4 sm:$0xff]   ;;  %v2646_v10 = vld [vmem:[#allocation2 + $0x40] ss:$16 sps:$4 sm:$0xff]   ;;  %1358 = vmatprep.mubr.bf16.mxu0 %v3170_v51  ;;  %v2735_v5 = vld [vmem:[#allocation2 + $0xc] ss:$16 sps:$4 sm:$0xff]  }
  0x2b   :  { %v2644_v9 = vld [vmem:[#allocation2 + $0x244] ss:$16 sps:$4 sm:$0xff]   ;;  %v2647_v11 = vld [vmem:[#allocation2 + $0x240] ss:$16 sps:$4 sm:$0xff]  }
  0x2c   :  { %1288 = vmatpush1.bf16.msra.mxu1 %v2640_v6  ;;  %v2648_v12 = vld [vmem:[#allocation2 + $0x64] ss:$16 sps:$4 sm:$0xff]   ;;  %v2652_v14 = vld [vmem:[#allocation2 + $0x60] ss:$16 sps:$4 sm:$0xff]  }
  0x2d   :  { %1329 = vmatpush1.bf16.msra.mxu0 %v2641_v7  ;;  %1289 = vmatprep.subr.bf16.mxu1 %v2642_v8  ;;  %v2650_v13 = vld [vmem:[#allocation2 + $0x264] ss:$16 sps:$4 sm:$0xff]   ;;  %v2653_v15 = vld [vmem:[#allocation2 + $0x260] ss:$16 sps:$4 sm:$0xff]   ;;  %v3176_v7 = vcombine.low %v56_v48, %v56_v48 }
  0x2e   :  { %1330 = vmatprep.subr.bf16.mxu0 %v2644_v9  ;;  %v2654_v16 = vld [vmem:[#allocation2 + $0x84] ss:$16 sps:$4 sm:$0xff]   ;;  %v2658_v18 = vld [vmem:[#allocation2 + $0x80] ss:$16 sps:$4 sm:$0xff]   ;;  %v2733_v9 = vld [vmem:[#allocation2 + $0x8] ss:$16 sps:$4 sm:$0xff]  }
  0x2f   :  { %v2656_v17 = vld [vmem:[#allocation2 + $0x284] ss:$16 sps:$4 sm:$0xff]   ;;  %v2659_v19 = vld [vmem:[#allocation2 + $0x280] ss:$16 sps:$4 sm:$0xff]  }
  0x30   :  { %1290 = vmatpush1.bf16.msra.mxu1 %v2646_v10  ;;  %v2660_v20 = vld [vmem:[#allocation2 + $0xa4] ss:$16 sps:$4 sm:$0xff]   ;;  %v2664_v22 = vld [vmem:[#allocation2 + $0xa0] ss:$16 sps:$4 sm:$0xff]  }
  0x31   :  { %1331 = vmatpush1.bf16.msra.mxu0 %v2647_v11  ;;  %1291 = vmatprep.subr.bf16.mxu1 %v2648_v12  ;;  %v2662_v21 = vld [vmem:[#allocation2 + $0x2a4] ss:$16 sps:$4 sm:$0xff]   ;;  %v2665_v23 = vld [vmem:[#allocation2 + $0x2a0] ss:$16 sps:$4 sm:$0xff]   ;;  %v2741_v11 = vld [vmem:[#allocation2 + $0x2c] ss:$16 sps:$4 sm:$0xff]  }
  0x32   :  { %1332 = vmatprep.subr.bf16.mxu0 %v2650_v13  ;;  %v2666_v24 = vld [vmem:[#allocation2 + $0xc4] ss:$16 sps:$4 sm:$0xff]   ;;  %v2670_v26 = vld [vmem:[#allocation2 + $0xc0] ss:$16 sps:$4 sm:$0xff]   ;;  %v2739_v13 = vld [vmem:[#allocation2 + $0x28] ss:$16 sps:$4 sm:$0xff]  }
  0x33   :  { %v2668_v25 = vld [vmem:[#allocation2 + $0x2c4] ss:$16 sps:$4 sm:$0xff]   ;;  %v2671_v27 = vld [vmem:[#allocation2 + $0x2c0] ss:$16 sps:$4 sm:$0xff]  }
  0x34   :  { %1292 = vmatpush1.bf16.msra.mxu1 %v2652_v14  ;;  %v2672_v28 = vld [vmem:[#allocation2 + $0xe4] ss:$16 sps:$4 sm:$0xff]   ;;  %v2676_v30 = vld [vmem:[#allocation2 + $0xe0] ss:$16 sps:$4 sm:$0xff]  }
  0x35   :  { %1333 = vmatpush1.bf16.msra.mxu0 %v2653_v15  ;;  %1293 = vmatprep.subr.bf16.mxu1 %v2654_v16  ;;  %v2674_v29 = vld [vmem:[#allocation2 + $0x2e4] ss:$16 sps:$4 sm:$0xff]   ;;  %v2677_v31 = vld [vmem:[#allocation2 + $0x2e0] ss:$16 sps:$4 sm:$0xff]   ;;  %v2747_v15 = vld [vmem:[#allocation2 + $0x4c] ss:$16 sps:$4 sm:$0xff]  }
  0x36   :  { %1334 = vmatprep.subr.bf16.mxu0 %v2656_v17  ;;  %v2678_v32 = vld [vmem:[#allocation2 + $0x104] ss:$16 sps:$4 sm:$0xff]   ;;  %v2682_v34 = vld [vmem:[#allocation2 + $0x100] ss:$16 sps:$4 sm:$0xff]   ;;  %v2745_v17 = vld [vmem:[#allocation2 + $0x48] ss:$16 sps:$4 sm:$0xff]  }
  0x37   :  { %v2680_v33 = vld [vmem:[#allocation2 + $0x304] ss:$16 sps:$4 sm:$0xff]   ;;  %v2683_v35 = vld [vmem:[#allocation2 + $0x300] ss:$16 sps:$4 sm:$0xff]  }
  0x38   :  { %1294 = vmatpush1.bf16.msra.mxu1 %v2658_v18  ;;  %v2684_v36 = vld [vmem:[#allocation2 + $0x124] ss:$16 sps:$4 sm:$0xff]   ;;  %v2688_v38 = vld [vmem:[#allocation2 + $0x120] ss:$16 sps:$4 sm:$0xff]  }
  0x39   :  { %1335 = vmatpush1.bf16.msra.mxu0 %v2659_v19  ;;  %1295 = vmatprep.subr.bf16.mxu1 %v2660_v20  ;;  %v2686_v37 = vld [vmem:[#allocation2 + $0x324] ss:$16 sps:$4 sm:$0xff]   ;;  %v2689_v39 = vld [vmem:[#allocation2 + $0x320] ss:$16 sps:$4 sm:$0xff]   ;;  %v2753_v19 = vld [vmem:[#allocation2 + $0x6c] ss:$16 sps:$4 sm:$0xff]  }
  0x3a   :  { %1336 = vmatprep.subr.bf16.mxu0 %v2662_v21  ;;  %v2690_v40 = vld [vmem:[#allocation2 + $0x144] ss:$16 sps:$4 sm:$0xff]   ;;  %v2694_v42 = vld [vmem:[#allocation2 + $0x140] ss:$16 sps:$4 sm:$0xff]   ;;  %v2751_v21 = vld [vmem:[#allocation2 + $0x68] ss:$16 sps:$4 sm:$0xff]  }
  0x3b   :  { %v2692_v41 = vld [vmem:[#allocation2 + $0x344] ss:$16 sps:$4 sm:$0xff]   ;;  %v2695_v43 = vld [vmem:[#allocation2 + $0x340] ss:$16 sps:$4 sm:$0xff]  }
  0x3c   :  { %1296 = vmatpush1.bf16.msra.mxu1 %v2664_v22  ;;  %v2696_v44 = vld [vmem:[#allocation2 + $0x164] ss:$16 sps:$4 sm:$0xff]   ;;  %v2700_v49 = vld [vmem:[#allocation2 + $0x160] ss:$16 sps:$4 sm:$0xff]  }
  0x3d   :  { %1337 = vmatpush1.bf16.msra.mxu0 %v2665_v23  ;;  %1297 = vmatprep.subr.bf16.mxu1 %v2666_v24  ;;  %v2698_v45 = vld [vmem:[#allocation2 + $0x364] ss:$16 sps:$4 sm:$0xff]   ;;  %v2701_v50 = vld [vmem:[#allocation2 + $0x360] ss:$16 sps:$4 sm:$0xff]   ;;  %v2759_v23 = vld [vmem:[#allocation2 + $0x8c] ss:$16 sps:$4 sm:$0xff]  }
  0x3e   :  { %1338 = vmatprep.subr.bf16.mxu0 %v2668_v25  ;;  %v55_v46 = vld [vmem:[%s3290_s0] sm:$0xff]  ;;  %v2757_v25 = vld [vmem:[#allocation2 + $0x88] ss:$16 sps:$4 sm:$0xff]  }
  0x3f   :  { %v3165_v47 = vcombine.high %v55_v46, %v55_v46  ;;  %v2702_v52 = vld [vmem:[#allocation2 + $0x184] ss:$16 sps:$4 sm:$0xff]   ;;  %v2706_v54 = vld [vmem:[#allocation2 + $0x180] ss:$16 sps:$4 sm:$0xff]   ;;  %v3174_v6 = vcombine.low %v55_v46, %v55_v46 }
  0x40   :  { %1298 = vmatpush1.bf16.msra.mxu1 %v2670_v26  ;;  %v2704_v53 = vld [vmem:[#allocation2 + $0x384] ss:$16 sps:$4 sm:$0xff]   ;;  %v2707_v55 = vld [vmem:[#allocation2 + $0x380] ss:$16 sps:$4 sm:$0xff]  }
  0x41   :  { %1339 = vmatpush1.bf16.msra.mxu0 %v2671_v27  ;;  %1299 = vmatprep.subr.bf16.mxu1 %v2672_v28  ;;  %v2708_v56 = vld [vmem:[#allocation2 + $0x1a4] ss:$16 sps:$4 sm:$0xff]   ;;  %v2712_v58 = vld [vmem:[#allocation2 + $0x1a0] ss:$16 sps:$4 sm:$0xff]   ;;  %v2765_v27 = vld [vmem:[#allocation2 + $0xac] ss:$16 sps:$4 sm:$0xff]  }
  0x42   :  { %1340 = vmatprep.subr.bf16.mxu0 %v2674_v29  ;;  %1317 = vmatprep.mubr.bf16.mxu1 %v3165_v47  ;;  %v2710_v57 = vld [vmem:[#allocation2 + $0x3a4] ss:$16 sps:$4 sm:$0xff]   ;;  %v2713_v59 = vld [vmem:[#allocation2 + $0x3a0] ss:$16 sps:$4 sm:$0xff]   ;;  %v2763_v29 = vld [vmem:[#allocation2 + $0xa8] ss:$16 sps:$4 sm:$0xff]  }
  0x43   :  { %v2714_v60 = vld [vmem:[#allocation2 + $0x1c4] ss:$16 sps:$4 sm:$0xff]   ;;  %v2718_v62 = vld [vmem:[#allocation2 + $0x1c0] ss:$16 sps:$4 sm:$0xff]  }
  0x44   :  { %1300 = vmatpush1.bf16.msra.mxu1 %v2676_v30  ;;  %v2716_v61 = vld [vmem:[#allocation2 + $0x3c4] ss:$16 sps:$4 sm:$0xff]   ;;  %v2719_v63 = vld [vmem:[#allocation2 + $0x3c0] ss:$16 sps:$4 sm:$0xff]  }
  0x45   :  { %1341 = vmatpush1.bf16.msra.mxu0 %v2677_v31  ;;  %1301 = vmatprep.subr.bf16.mxu1 %v2678_v32  ;;  %v2720_v0 = vld [vmem:[#allocation2 + $0x1e4] ss:$16 sps:$4 sm:$0xff]   ;;  %v2724_v2 = vld [vmem:[#allocation2 + $0x1e0] ss:$16 sps:$4 sm:$0xff]   ;;  %v2771_v31 = vld [vmem:[#allocation2 + $0xcc] ss:$16 sps:$4 sm:$0xff]  }
  0x46   :  { %1342 = vmatprep.subr.bf16.mxu0 %v2680_v33  ;;  %v2722_v1 = vld [vmem:[#allocation2 + $0x3e4] ss:$16 sps:$4 sm:$0xff]   ;;  %v2725_v3 = vld [vmem:[#allocation2 + $0x3e0] ss:$16 sps:$4 sm:$0xff]  }
  0x47   :  { %v2732_v4 = vld [vmem:[#allocation2 + $0x404] ss:$16 sps:$4 sm:$0xff]   ;;  %v2730_v8 = vld [vmem:[#allocation2 + $0x400] ss:$16 sps:$4 sm:$0xff]  }
  0x48   :  { %1302 = vmatpush1.bf16.msra.mxu1 %v2682_v34  ;;  %v2738_v10 = vld [vmem:[#allocation2 + $0x424] ss:$16 sps:$4 sm:$0xff]   ;;  %v2736_v12 = vld [vmem:[#allocation2 + $0x420] ss:$16 sps:$4 sm:$0xff]  }
  0x49   :  { %1343 = vmatpush1.bf16.msra.mxu0 %v2683_v35  ;;  %1303 = vmatprep.subr.bf16.mxu1 %v2684_v36  ;;  %v2744_v14 = vld [vmem:[#allocation2 + $0x444] ss:$16 sps:$4 sm:$0xff]   ;;  %v2742_v16 = vld [vmem:[#allocation2 + $0x440] ss:$16 sps:$4 sm:$0xff]   ;;  %v2769_v35 = vld [vmem:[#allocation2 + $0xc8] ss:$16 sps:$4 sm:$0xff]  }
  0x4a   :  { %1344 = vmatprep.subr.bf16.mxu0 %v2686_v37  ;;  %v2750_v18 = vld [vmem:[#allocation2 + $0x464] ss:$16 sps:$4 sm:$0xff]   ;;  %v2748_v20 = vld [vmem:[#allocation2 + $0x460] ss:$16 sps:$4 sm:$0xff]   ;;  %v2777_v37 = vld [vmem:[#allocation2 + $0xec] ss:$16 sps:$4 sm:$0xff]  }
  0x4b   :  { %v2756_v22 = vld [vmem:[#allocation2 + $0x484] ss:$16 sps:$4 sm:$0xff]   ;;  %v2754_v24 = vld [vmem:[#allocation2 + $0x480] ss:$16 sps:$4 sm:$0xff]  }
  0x4c   :  { %1304 = vmatpush1.bf16.msra.mxu1 %v2688_v38  ;;  %v2762_v26 = vld [vmem:[#allocation2 + $0x4a4] ss:$16 sps:$4 sm:$0xff]   ;;  %v2760_v28 = vld [vmem:[#allocation2 + $0x4a0] ss:$16 sps:$4 sm:$0xff]  }
  0x4d   :  { %1345 = vmatpush1.bf16.msra.mxu0 %v2689_v39  ;;  %1305 = vmatprep.subr.bf16.mxu1 %v2690_v40  ;;  %v2768_v30 = vld [vmem:[#allocation2 + $0x4c4] ss:$16 sps:$4 sm:$0xff]   ;;  %v2766_v33 = vld [vmem:[#allocation2 + $0x4c0] ss:$16 sps:$4 sm:$0xff]   ;;  %v2775_v39 = vld [vmem:[#allocation2 + $0xe8] ss:$16 sps:$4 sm:$0xff]  }
  0x4e   :  { %1346 = vmatprep.subr.bf16.mxu0 %v2692_v41  ;;  %v3184_v32 = vld [vmem:[%s3290_s0 + $0x10] sm:$0xff]  ;;  %v2783_v41 = vld [vmem:[#allocation2 + $0x10c] ss:$16 sps:$4 sm:$0xff]  }
  0x4f   :  { %v3188_v34 = vcombine.high %v3184_v32, %v3184_v32  ;;  %v2774_v36 = vld [vmem:[#allocation2 + $0x4e4] ss:$16 sps:$4 sm:$0xff]   ;;  %v2772_v38 = vld [vmem:[#allocation2 + $0x4e0] ss:$16 sps:$4 sm:$0xff]  }
  0x50   :  { %1306 = vmatpush1.bf16.msra.mxu1 %v2694_v42  ;;  %v2780_v40 = vld [vmem:[#allocation2 + $0x504] ss:$16 sps:$4 sm:$0xff]   ;;  %v2778_v42 = vld [vmem:[#allocation2 + $0x500] ss:$16 sps:$4 sm:$0xff]  }
  0x51   :  { %1347 = vmatpush1.bf16.msra.mxu0 %v2695_v43  ;;  %1307 = vmatprep.subr.bf16.mxu1 %v2696_v44  ;;  %v2781_v43 = vld [vmem:[#allocation2 + $0x108] ss:$16 sps:$4 sm:$0xff]   ;;  %v2786_v44 = vld [vmem:[#allocation2 + $0x524] ss:$16 sps:$4 sm:$0xff]   ;;  %v2784_v46 = vld [vmem:[#allocation2 + $0x520] ss:$16 sps:$4 sm:$0xff]  }
  0x52   :  { %1348 = vmatprep.subr.bf16.mxu0 %v2698_v45  ;;  %v2789_v45 = vld [vmem:[#allocation2 + $0x12c] ss:$16 sps:$4 sm:$0xff]   ;;  %v2792_v48 = vld [vmem:[#allocation2 + $0x544] ss:$16 sps:$4 sm:$0xff]  }
  0x54   :  { %1308 = vmatpush1.bf16.msra.mxu1 %v2700_v49  ;;  %v2795_v49 = vld [vmem:[#allocation2 + $0x14c] ss:$16 sps:$4 sm:$0xff]  }
  0x55   :  { %1349 = vmatpush1.bf16.msra.mxu0 %v2701_v50  ;;  %1309 = vmatprep.subr.bf16.mxu1 %v2702_v52  ;;  %v2790_v50 = vld [vmem:[#allocation2 + $0x540] ss:$16 sps:$4 sm:$0xff]   ;;  %v2793_v52 = vld [vmem:[#allocation2 + $0x148] ss:$16 sps:$4 sm:$0xff]  }
  0x56   :  { %1350 = vmatprep.subr.bf16.mxu0 %v2704_v53  ;;  %v2798_v53 = vld [vmem:[#allocation2 + $0x564] ss:$16 sps:$4 sm:$0xff]  }
  0x58   :  { %1310 = vmatpush1.bf16.msra.mxu1 %v2706_v54  ;;  %v2801_v54 = vld [vmem:[#allocation2 + $0x16c] ss:$16 sps:$4 sm:$0xff]  }
  0x59   :  { %1351 = vmatpush1.bf16.msra.mxu0 %v2707_v55  ;;  %1311 = vmatprep.subr.bf16.mxu1 %v2708_v56  ;;  %v2796_v55 = vld [vmem:[#allocation2 + $0x560] ss:$16 sps:$4 sm:$0xff]   ;;  %v2799_v56 = vld [vmem:[#allocation2 + $0x168] ss:$16 sps:$4 sm:$0xff]  }
  0x5a   :  { %1352 = vmatprep.subr.bf16.mxu0 %v2710_v57  ;;  %v2804_v57 = vld [vmem:[#allocation2 + $0x584] ss:$16 sps:$4 sm:$0xff]  }
  0x5c   :  { %1312 = vmatpush1.bf16.msra.mxu1 %v2712_v58  ;;  %v2807_v58 = vld [vmem:[#allocation2 + $0x18c] ss:$16 sps:$4 sm:$0xff]  }
  0x5d   :  { %1353 = vmatpush1.bf16.msra.mxu0 %v2713_v59  ;;  %1313 = vmatprep.subr.bf16.mxu1 %v2714_v60  ;;  %v2802_v59 = vld [vmem:[#allocation2 + $0x580] ss:$16 sps:$4 sm:$0xff]   ;;  %v2805_v60 = vld [vmem:[#allocation2 + $0x188] ss:$16 sps:$4 sm:$0xff]  }
  0x5e   :  { %1354 = vmatprep.subr.bf16.mxu0 %v2716_v61  ;;  %v2810_v61 = vld [vmem:[#allocation2 + $0x5a4] ss:$16 sps:$4 sm:$0xff]  }
  0x60   :  { %1314 = vmatpush1.bf16.msra.mxu1 %v2718_v62  ;;  %v2813_v62 = vld [vmem:[#allocation2 + $0x1ac] ss:$16 sps:$4 sm:$0xff]  }
  0x61   :  { %1355 = vmatpush1.bf16.msra.mxu0 %v2719_v63  ;;  %1315 = vmatprep.subr.bf16.mxu1 %v2720_v0  ;;  %v2808_v63 = vld [vmem:[#allocation2 + $0x5a0] ss:$16 sps:$4 sm:$0xff]   ;;  %v2811_v0 = vld [vmem:[#allocation2 + $0x1a8] ss:$16 sps:$4 sm:$0xff]  }
  0x62   :  { %1356 = vmatprep.subr.bf16.mxu0 %v2722_v1  ;;  %v2816_v1 = vld [vmem:[#allocation2 + $0x5c4] ss:$16 sps:$4 sm:$0xff]  }
  0x64   :  { %1316 = vmatpush1.bf16.msra.mxu1 %v2724_v2  ;;  %v2819_v2 = vld [vmem:[#allocation2 + $0x1cc] ss:$16 sps:$4 sm:$0xff]  }
  0x65   :  { %1357 = vmatpush1.bf16.msra.mxu0 %v2725_v3  ;;  %1449 = vmatprep.subr.bf16.mxu1 %v2735_v5  ;;  %v2814_v3 = vld [vmem:[#allocation2 + $0x5c0] ss:$16 sps:$4 sm:$0xff]   ;;  %v2822_v5 = vld [vmem:[#allocation2 + $0x5e4] ss:$16 sps:$4 sm:$0xff]  }
  0x66   :  { %1367 = vmatprep.subr.bf16.mxu0 %v2732_v4  ;;  %v2817_v4 = vld [vmem:[#allocation2 + $0x1c8] ss:$16 sps:$4 sm:$0xff]  }
  0x67   :  { %1318 = vmatmul.mubr.bf16.vlgmr.msra.gmra.mrb[0].mxu1 %v3174_v6 }
  0x68   :  { %1359 = vmatmul.mubr.bf16.vlgmr.msra.gmra.mrb[0].mxu0 %v3176_v7  ;;  %1450 = vmatpush1.bf16.msra.mxu1 %v2733_v9  ;;  %v2820_v9 = vld [vmem:[#allocation2 + $0x5e0] ss:$16 sps:$4 sm:$0xff]  }
  0x69   :  { %1368 = vmatpush1.bf16.msra.mxu0 %v2730_v8  ;;  %1451 = vmatprep.subr.bf16.mxu1 %v2741_v11  ;;  %v2825_v8 = vld [vmem:[#allocation2 + $0x1ec] ss:$16 sps:$4 sm:$0xff]  }
  0x6a   :  { %1369 = vmatprep.subr.bf16.mxu0 %v2738_v10  ;;  %1481 = vmatprep.mubr.bf16.mxu1 %v3165_v47  ;;  %v2787_v47 = vld [vmem:[#allocation2 + $0x128] ss:$16 sps:$4 sm:$0xff]   ;;  %v2830_v11 = vld [vmem:[#allocation2 + $0x20c] ss:$16 sps:$4 sm:$0xff]  }
  0x6b   :  { %1399 = vmatprep.mubr.bf16.mxu0 %v3188_v34  ;;  %v2823_v10 = vld [vmem:[#allocation2 + $0x1e8] ss:$16 sps:$4 sm:$0xff]  }
  0x6c   :  { %1452 = vmatpush1.bf16.msra.mxu1 %v2739_v13  ;;  %v3193_v13 = vcombine.low %v3184_v32, %v3184_v32  ;;  %v2933_v32 = vld [vmem:[#allocation4 + $0x4] ss:$8 sps:$4 sm:$0xff]  }
  0x6d   :  { %1370 = vmatpush1.bf16.msra.mxu0 %v2736_v12  ;;  %1453 = vmatprep.subr.bf16.mxu1 %v2747_v15  ;;  %v2836_v12 = vld [vmem:[#allocation2 + $0x604] ss:$16 sps:$4 sm:$0xff]   ;;  %v2834_v15 = vld [vmem:[#allocation2 + $0x600] ss:$16 sps:$4 sm:$0xff]  }
  0x6e   :  { %1371 = vmatprep.subr.bf16.mxu0 %v2744_v14  ;;  %v2828_v14 = vld [vmem:[#allocation2 + $0x208] ss:$16 sps:$4 sm:$0xff]  }
  0x70   :  { %1454 = vmatpush1.bf16.msra.mxu1 %v2745_v17  ;;  %v2927_v17 = vld [vmem:[#allocation2 + $0x60c] ss:$16 sps:$4 sm:$0xff]  }
  0x71   :  { %1372 = vmatpush1.bf16.msra.mxu0 %v2742_v16  ;;  %1455 = vmatprep.subr.bf16.mxu1 %v2753_v19  ;;  %v2833_v16 = vld [vmem:[#allocation2 + $0x22c] ss:$16 sps:$4 sm:$0xff]  }
  0x72   :  { %1373 = vmatprep.subr.bf16.mxu0 %v2750_v18  ;;  %v2831_v18 = vld [vmem:[#allocation2 + $0x228] ss:$16 sps:$4 sm:$0xff]   ;;  %v2839_v19 = vld [vmem:[#allocation2 + $0x24c] ss:$16 sps:$4 sm:$0xff]  }
  0x74   :  { %1456 = vmatpush1.bf16.msra.mxu1 %v2751_v21  ;;  %v2837_v21 = vld [vmem:[#allocation2 + $0x248] ss:$16 sps:$4 sm:$0xff]  }
  0x75   :  { %1374 = vmatpush1.bf16.msra.mxu0 %v2748_v20  ;;  %1457 = vmatprep.subr.bf16.mxu1 %v2759_v23  ;;  %v3097_v20 = vmov 0   ;;  %v2840_v23 = vld [vmem:[%s3290_s0 + $0x18] ss:$0 sps:$4 sm:$0xff]  }
  0x76   :  { %1375 = vmatprep.subr.bf16.mxu0 %v2756_v22  ;;  %v2843_v22 = vld [vmem:[#allocation2 + $0x26c] ss:$16 sps:$4 sm:$0xff]  }
  0x78   :  { %1458 = vmatpush1.bf16.msra.mxu1 %v2757_v25  ;;  %v2846_v25 = vld [vmem:[#allocation2 + $0x28c] ss:$16 sps:$4 sm:$0xff]  }
  0x79   :  { %1376 = vmatpush1.bf16.msra.mxu0 %v2754_v24  ;;  %1459 = vmatprep.subr.bf16.mxu1 %v2765_v27  ;;  %v2841_v24 = vld [vmem:[#allocation2 + $0x268] ss:$16 sps:$4 sm:$0xff]   ;;  %v2849_v27 = vld [vmem:[#allocation2 + $0x2ac] ss:$16 sps:$4 sm:$0xff]  }
  0x7a   :  { %1377 = vmatprep.subr.bf16.mxu0 %v2762_v26  ;;  %v2844_v26 = vld [vmem:[#allocation2 + $0x288] ss:$16 sps:$4 sm:$0xff]  }
  0x7c   :  { %1460 = vmatpush1.bf16.msra.mxu1 %v2763_v29  ;;  %v2850_v29 = vld [vmem:[#allocation2 + $0x2c8] ss:$16 sps:$4 sm:$0xff]  }
  0x7d   :  { %1378 = vmatpush1.bf16.msra.mxu0 %v2760_v28  ;;  %1461 = vmatprep.subr.bf16.mxu1 %v2771_v31  ;;  %v2852_v28 = vld [vmem:[#allocation2 + $0x2cc] ss:$16 sps:$4 sm:$0xff]   ;;  %v2931_v31 = vld [vmem:[#allocation4] ss:$8 sps:$4 sm:$0xff]  }
  0x7e   :  { %1379 = vmatprep.subr.bf16.mxu0 %v2768_v30  ;;  %v2855_v30 = vld [vmem:[#allocation2 + $0x2ec] ss:$16 sps:$4 sm:$0xff]  }
  0x80   :  { %1462 = vmatpush1.bf16.msra.mxu1 %v2769_v35  ;;  %v2853_v35 = vld [vmem:[#allocation2 + $0x2e8] ss:$16 sps:$4 sm:$0xff]  }
  0x81   :  { %1380 = vmatpush1.bf16.msra.mxu0 %v2766_v33  ;;  %1463 = vmatprep.subr.bf16.mxu1 %v2777_v37  ;;  %v2936_v33 = vld [vmem:[#allocation4 + $0x14] ss:$8 sps:$4 sm:$0xff]  }
  0x82   :  { %1381 = vmatprep.subr.bf16.mxu0 %v2774_v36  ;;  %v2934_v36 = vld [vmem:[#allocation4 + $0x10] ss:$8 sps:$4 sm:$0xff]   ;;  %v2858_v37 = vld [vmem:[#allocation2 + $0x30c] ss:$16 sps:$4 sm:$0xff]  }
  0x84   :  { %1464 = vmatpush1.bf16.msra.mxu1 %v2775_v39  ;;  %v2856_v39 = vld [vmem:[#allocation2 + $0x308] ss:$16 sps:$4 sm:$0xff]  }
  0x85   :  { %1382 = vmatpush1.bf16.msra.mxu0 %v2772_v38  ;;  %1465 = vmatprep.subr.bf16.mxu1 %v2783_v41  ;;  %v2939_v38 = vld [vmem:[#allocation4 + $0x24] ss:$8 sps:$4 sm:$0xff]  }
  0x86   :  { %1383 = vmatprep.subr.bf16.mxu0 %v2780_v40  ;;  %v2937_v40 = vld [vmem:[#allocation4 + $0x20] ss:$8 sps:$4 sm:$0xff]   ;;  %v2861_v41 = vld [vmem:[#allocation2 + $0x32c] ss:$16 sps:$4 sm:$0xff]  }
  0x88   :  { %1466 = vmatpush1.bf16.msra.mxu1 %v2781_v43  ;;  %v2859_v43 = vld [vmem:[#allocation2 + $0x328] ss:$16 sps:$4 sm:$0xff]  }
  0x89   :  { %1384 = vmatpush1.bf16.msra.mxu0 %v2778_v42  ;;  %1467 = vmatprep.subr.bf16.mxu1 %v2789_v45  ;;  %v2942_v42 = vld [vmem:[#allocation4 + $0x34] ss:$8 sps:$4 sm:$0xff]  }
  0x8a   :  { %1385 = vmatprep.subr.bf16.mxu0 %v2786_v44  ;;  %v2940_v44 = vld [vmem:[#allocation4 + $0x30] ss:$8 sps:$4 sm:$0xff]   ;;  %v2864_v45 = vld [vmem:[#allocation2 + $0x34c] ss:$16 sps:$4 sm:$0xff]  }
  0x8c   :  { %1468 = vmatpush1.bf16.msra.mxu1 %v2787_v47  ;;  %v2862_v47 = vld [vmem:[#allocation2 + $0x348] ss:$16 sps:$4 sm:$0xff]  }
  0x8d   :  { %1386 = vmatpush1.bf16.msra.mxu0 %v2784_v46  ;;  %1469 = vmatprep.subr.bf16.mxu1 %v2795_v49  ;;  %v2945_v46 = vld [vmem:[#allocation4 + $0x44] ss:$8 sps:$4 sm:$0xff]  }
  0x8e   :  { %1387 = vmatprep.subr.bf16.mxu0 %v2792_v48  ;;  %v2943_v48 = vld [vmem:[#allocation4 + $0x40] ss:$8 sps:$4 sm:$0xff]   ;;  %v2867_v49 = vld [vmem:[#allocation2 + $0x36c] ss:$16 sps:$4 sm:$0xff]  }
  0x90   :  { %1470 = vmatpush1.bf16.msra.mxu1 %v2793_v52  ;;  %v2865_v52 = vld [vmem:[#allocation2 + $0x368] ss:$16 sps:$4 sm:$0xff]  }
  0x91   :  { %1388 = vmatpush1.bf16.msra.mxu0 %v2790_v50  ;;  %1471 = vmatprep.subr.bf16.mxu1 %v2801_v54  ;;  %v2948_v50 = vld [vmem:[#allocation4 + $0x54] ss:$8 sps:$4 sm:$0xff]  }
  0x92   :  { %1389 = vmatprep.subr.bf16.mxu0 %v2798_v53  ;;  %v2946_v53 = vld [vmem:[#allocation4 + $0x50] ss:$8 sps:$4 sm:$0xff]   ;;  %v2870_v54 = vld [vmem:[#allocation2 + $0x38c] ss:$16 sps:$4 sm:$0xff]  }
  0x94   :  { %1472 = vmatpush1.bf16.msra.mxu1 %v2799_v56  ;;  %v2868_v56 = vld [vmem:[#allocation2 + $0x388] ss:$16 sps:$4 sm:$0xff]  }
  0x95   :  { %1390 = vmatpush1.bf16.msra.mxu0 %v2796_v55  ;;  %1473 = vmatprep.subr.bf16.mxu1 %v2807_v58  ;;  %v2951_v55 = vld [vmem:[#allocation4 + $0x64] ss:$8 sps:$4 sm:$0xff]  }
  0x96   :  { %1391 = vmatprep.subr.bf16.mxu0 %v2804_v57  ;;  %v2949_v57 = vld [vmem:[#allocation4 + $0x60] ss:$8 sps:$4 sm:$0xff]   ;;  %v2873_v58 = vld [vmem:[#allocation2 + $0x3ac] ss:$16 sps:$4 sm:$0xff]  }
  0x98   :  { %1474 = vmatpush1.bf16.msra.mxu1 %v2805_v60  ;;  %v2871_v60 = vld [vmem:[#allocation2 + $0x3a8] ss:$16 sps:$4 sm:$0xff]  }
  0x99   :  { %1392 = vmatpush1.bf16.msra.mxu0 %v2802_v59  ;;  %1475 = vmatprep.subr.bf16.mxu1 %v2813_v62  ;;  %v2954_v59 = vld [vmem:[#allocation4 + $0x74] ss:$8 sps:$4 sm:$0xff]  }
  0x9a   :  { %1393 = vmatprep.subr.bf16.mxu0 %v2810_v61  ;;  %v2952_v61 = vld [vmem:[#allocation4 + $0x70] ss:$8 sps:$4 sm:$0xff]   ;;  %v2876_v62 = vld [vmem:[#allocation2 + $0x3cc] ss:$16 sps:$4 sm:$0xff]  }
  0x9c   :  { %1476 = vmatpush1.bf16.msra.mxu1 %v2811_v0  ;;  %v2874_v0 = vld [vmem:[#allocation2 + $0x3c8] ss:$16 sps:$4 sm:$0xff]  }
  0x9d   :  { %1394 = vmatpush1.bf16.msra.mxu0 %v2808_v63  ;;  %1477 = vmatprep.subr.bf16.mxu1 %v2819_v2  ;;  %v2957_v63 = vld [vmem:[#allocation4 + $0x84] ss:$8 sps:$4 sm:$0xff]  }
  0x9e   :  { %1395 = vmatprep.subr.bf16.mxu0 %v2816_v1  ;;  %v2955_v1 = vld [vmem:[#allocation4 + $0x80] ss:$8 sps:$4 sm:$0xff]   ;;  %v2879_v2 = vld [vmem:[#allocation2 + $0x3ec] ss:$16 sps:$4 sm:$0xff]  }
  0xa0   :  { %1478 = vmatpush1.bf16.msra.mxu1 %v2817_v4  ;;  %v2877_v4 = vld [vmem:[#allocation2 + $0x3e8] ss:$16 sps:$4 sm:$0xff]  }
  0xa1   :  { %1396 = vmatpush1.bf16.msra.mxu0 %v2814_v3  ;;  %1479 = vmatprep.subr.bf16.mxu1 %v2825_v8  ;;  %v2960_v3 = vld [vmem:[#allocation4 + $0x94] ss:$8 sps:$4 sm:$0xff]  }
  0xa2   :  { %1397 = vmatprep.subr.bf16.mxu0 %v2822_v5  ;;  %v2958_v5 = vld [vmem:[#allocation4 + $0x90] ss:$8 sps:$4 sm:$0xff]   ;;  %v2882_v8 = vld [vmem:[#allocation2 + $0x40c] ss:$16 sps:$4 sm:$0xff]  }
  0xa4   :  { %1480 = vmatpush1.bf16.msra.mxu1 %v2823_v10  ;;  %v2880_v10 = vld [vmem:[#allocation2 + $0x408] ss:$16 sps:$4 sm:$0xff]  }
  0xa5   :  { %1398 = vmatpush1.bf16.msra.mxu0 %v2820_v9  ;;  %1490 = vmatprep.subr.bf16.mxu1 %v2830_v11  ;;  %v2963_v9 = vld [vmem:[#allocation4 + $0xa4] ss:$8 sps:$4 sm:$0xff]  }
  0xa6   :  { %1408 = vmatprep.subr.bf16.mxu0 %v2836_v12  ;;  %v2885_v11 = vld [vmem:[#allocation2 + $0x42c] ss:$16 sps:$4 sm:$0xff]   ;;  %v2961_v12 = vld [vmem:[#allocation4 + $0xa0] ss:$8 sps:$4 sm:$0xff]  }
  0xa7   :  { %1482 = vmatmul.mubr.bf16.vlgmr.msra.gmra.mrb[4].mxu1 %v3174_v6  ;;  %v2925_v6 = vld [vmem:[#allocation2 + $0x608] ss:$16 sps:$4 sm:$0xff]  }
  0xa8   :  { %1400 = vmatmul.mubr.bf16.vlgmr.msra.gmra.mrb[0].mxu0 %v3193_v13  ;;  %1491 = vmatpush1.bf16.msra.mxu1 %v2828_v14  ;;  %v2966_v14 = vld [vmem:[#allocation4 + $0xb4] ss:$8 sps:$4 sm:$0xff]  }
  0xa9   :  { %1409 = vmatpush1.bf16.msra.mxu0 %v2834_v15  ;;  %1492 = vmatprep.subr.bf16.mxu1 %v2833_v16  ;;  %v2883_v15 = vld [vmem:[#allocation2 + $0x428] ss:$16 sps:$4 sm:$0xff]   ;;  %v2888_v16 = vld [vmem:[#allocation2 + $0x44c] ss:$16 sps:$4 sm:$0xff]  }
  0xaa   :  { %1440 = vmatprep.mubr.bf16.mxu0 %v3097_v20  ;;  %1522 = vmatprep.mubr.bf16.mxu1 %v3170_v51  ;;  %v2847_v51 = vld [vmem:[#allocation2 + $0x2a8] ss:$16 sps:$4 sm:$0xff]  }
  0xab   :  { %1572 = vmatprep.subr.bf16.mxu0 %v2927_v17  ;;  %v2964_v17 = vld [vmem:[#allocation4 + $0xb0] ss:$8 sps:$4 sm:$0xff]  }
  0xac   :  { %1493 = vmatpush1.bf16.msra.mxu1 %v2831_v18  ;;  %v2969_v18 = vld [vmem:[#allocation4 + $0xc4] ss:$8 sps:$4 sm:$0xff]  }
  0xad   :  { %1494 = vmatprep.subr.bf16.mxu1 %v2839_v19  ;;  %v2886_v19 = vld [vmem:[#allocation2 + $0x448] ss:$16 sps:$4 sm:$0xff]  }
  0xb0   :  { %1495 = vmatpush1.bf16.msra.mxu1 %v2837_v21  ;;  %v2967_v21 = vld [vmem:[#allocation4 + $0xc0] ss:$8 sps:$4 sm:$0xff]  }
  0xb1   :  { %1496 = vmatprep.subr.bf16.mxu1 %v2843_v22  ;;  %v2972_v22 = vld [vmem:[#allocation4 + $0xd4] ss:$8 sps:$4 sm:$0xff]  }
  0xb4   :  { %2488 = vmatmul.mubr.msk.bf16.vlgmr.msra.gmra.mrb[0].mxu0 %vm1281_vm0, %v2840_v23  ;;  %1497 = vmatpush1.bf16.msra.mxu1 %v2841_v24  ;;  %v2892_v24 = vld [vmem:[#allocation2 + $0x488] ss:$16 sps:$4 sm:$0xff]  }
  0xb5   :  { %1573 = vmatpush1.bf16.msra.mxu0 %v2925_v6  ;;  %1498 = vmatprep.subr.bf16.mxu1 %v2846_v25  ;;  %v2897_v6 = vld [vmem:[#allocation2 + $0x4ac] ss:$16 sps:$4 sm:$0xff]   ;;  %v2895_v25 = vld [vmem:[#allocation2 + $0x4a8] ss:$16 sps:$4 sm:$0xff]  }
  0xb6   :  { %1604 = vmatprep.mubr.bf16.mxu0 %v3097_v20  ;;  %2017 = vmatprep.subr.bf16.mxu0 %v2933_v32  ;;  %v2891_v20 = vld [vmem:[#allocation2 + $0x46c] ss:$16 sps:$4 sm:$0xff]  }
  0xb7   :  { %v2975_v32 = vld [vmem:[#allocation4 + $0xe4] ss:$8 sps:$4 sm:$0xff]  }
  0xb8   :  { %1499 = vmatpush1.bf16.msra.mxu1 %v2844_v26  ;;  %v2900_v26 = vld [vmem:[#allocation2 + $0x4cc] ss:$16 sps:$4 sm:$0xff]  }
  0xb9   :  { %1500 = vmatprep.subr.bf16.mxu1 %v2849_v27  ;;  %v2898_v27 = vld [vmem:[#allocation2 + $0x4c8] ss:$16 sps:$4 sm:$0xff]  }
  0xbc   :  { %2489 = vmatmul.mubr.msk.bf16.vlgmr.msra.gmra.mrb[4].mxu0 %vm1281_vm0, %v2840_v23  ;;  %1501 = vmatpush1.bf16.msra.mxu1 %v2847_v51  ;;  %v2894_v23 = vld [vmem:[#allocation2 + $0x48c] ss:$16 sps:$4 sm:$0xff]  }
  0xbd   :  { %1502 = vmatprep.subr.bf16.mxu1 %v2852_v28  ;;  %2018 = vmatpush1.bf16.msra.mxu0 %v2931_v31  ;;  %v2903_v51 = vld [vmem:[#allocation2 + $0x4ec] ss:$16 sps:$4 sm:$0xff]   ;;  %v2901_v28 = vld [vmem:[#allocation2 + $0x4e8] ss:$16 sps:$4 sm:$0xff]  }
  0xbe   :  { %2019 = vmatprep.subr.bf16.mxu0 %v2936_v33  ;;  %v2909_v31 = vld [vmem:[#allocation2 + $0x52c] ss:$16 sps:$4 sm:$0xff]   ;;  %v2973_v33 = vld [vmem:[#allocation4 + $0xe0] ss:$8 sps:$4 sm:$0xff]  }
  0xc0   :  { %1503 = vmatpush1.bf16.msra.mxu1 %v2850_v29  ;;  %v2906_v29 = vld [vmem:[#allocation2 + $0x50c] ss:$16 sps:$4 sm:$0xff]  }
  0xc1   :  { %1504 = vmatprep.subr.bf16.mxu1 %v2855_v30  ;;  %2020 = vmatpush1.bf16.msra.mxu0 %v2934_v36  ;;  %v2904_v30 = vld [vmem:[#allocation2 + $0x508] ss:$16 sps:$4 sm:$0xff]   ;;  %v2912_v36 = vld [vmem:[#allocation2 + $0x54c] ss:$16 sps:$4 sm:$0xff]  }
  0xc2   :  { %2021 = vmatprep.subr.bf16.mxu0 %v2939_v38  ;;  %v2976_v38 = vld [vmem:[#allocation4 + $0xf0] ss:$8 sps:$4 sm:$0xff]  }
  0xc4   :  { %1505 = vmatpush1.bf16.msra.mxu1 %v2853_v35  ;;  %v2907_v35 = vld [vmem:[#allocation2 + $0x528] ss:$16 sps:$4 sm:$0xff]  }
  0xc5   :  { %1506 = vmatprep.subr.bf16.mxu1 %v2858_v37  ;;  %2022 = vmatpush1.bf16.msra.mxu0 %v2937_v40  ;;  %v2978_v37 = vld [vmem:[#allocation4 + $0xf4] ss:$8 sps:$4 sm:$0xff]  }
  0xc6   :  { %2023 = vmatprep.subr.bf16.mxu0 %v2942_v42  ;;  %v2915_v40 = vld [vmem:[#allocation2 + $0x56c] ss:$16 sps:$4 sm:$0xff]   ;;  %v2913_v42 = vld [vmem:[#allocation2 + $0x568] ss:$16 sps:$4 sm:$0xff]  }
  0xc8   :  { %1507 = vmatpush1.bf16.msra.mxu1 %v2856_v39  ;;  %v2910_v39 = vld [vmem:[#allocation2 + $0x548] ss:$16 sps:$4 sm:$0xff]  }
  0xc9   :  { %1508 = vmatprep.subr.bf16.mxu1 %v2861_v41  ;;  %2024 = vmatpush1.bf16.msra.mxu0 %v2940_v44  ;;  %v2981_v41 = vld [vmem:[#allocation4 + $0x104] ss:$8 sps:$4 sm:$0xff]   ;;  %v2916_v44 = vld [vmem:[#allocation2 + $0x588] ss:$16 sps:$4 sm:$0xff]  }
  0xca   :  { %2025 = vmatprep.subr.bf16.mxu0 %v2945_v46  ;;  %v2919_v46 = vld [vmem:[#allocation2 + $0x5a8] ss:$16 sps:$4 sm:$0xff]  }
  0xcc   :  { %1509 = vmatpush1.bf16.msra.mxu1 %v2859_v43  ;;  %v2918_v43 = vld [vmem:[#allocation2 + $0x58c] ss:$16 sps:$4 sm:$0xff]  }
  0xcd   :  { %1510 = vmatprep.subr.bf16.mxu1 %v2864_v45  ;;  %2026 = vmatpush1.bf16.msra.mxu0 %v2943_v48  ;;  %v2921_v45 = vld [vmem:[#allocation2 + $0x5ac] ss:$16 sps:$4 sm:$0xff]   ;;  %v2922_v48 = vld [vmem:[#allocation2 + $0x5c8] ss:$16 sps:$4 sm:$0xff]  }
  0xce   :  { %2027 = vmatprep.subr.bf16.mxu0 %v2948_v50  ;;  %v2928_v50 = vld [vmem:[#allocation2 + $0x5e8] ss:$16 sps:$4 sm:$0xff]  }
  0xd0   :  { %1511 = vmatpush1.bf16.msra.mxu1 %v2862_v47  ;;  %v2924_v47 = vld [vmem:[#allocation2 + $0x5cc] ss:$16 sps:$4 sm:$0xff]  }
  0xd1   :  { %1512 = vmatprep.subr.bf16.mxu1 %v2867_v49  ;;  %2028 = vmatpush1.bf16.msra.mxu0 %v2946_v53  ;;  %v2930_v49 = vld [vmem:[#allocation2 + $0x5ec] ss:$16 sps:$4 sm:$0xff]  }
  0xd2   :  { %2029 = vmatprep.subr.bf16.mxu0 %v2951_v55 }
  0xd4   :  { %1513 = vmatpush1.bf16.msra.mxu1 %v2865_v52 }
  0xd5   :  { %1514 = vmatprep.subr.bf16.mxu1 %v2870_v54  ;;  %2030 = vmatpush1.bf16.msra.mxu0 %v2949_v57 }
  0xd6   :  { %2031 = vmatprep.subr.bf16.mxu0 %v2954_v59  ;;  %v3210_v59 = vld [vmem:[%s3292_s2] sm:$0xf] }
  0xd8   :  { %1515 = vmatpush1.bf16.msra.mxu1 %v2868_v56  ;;  %v257_v56 = vlaneseq }
  0xd9   :  { %1516 = vmatprep.subr.bf16.mxu1 %v2873_v58  ;;  %2032 = vmatpush1.bf16.msra.mxu0 %v2952_v61 }
  0xda   :  { %2033 = vmatprep.subr.bf16.mxu0 %v2957_v63  ;;  %v3204_v57 = vshrl.u32 %v257_v56, 7  ;;  %v3027_v63 = vld [vmem:[%s3295_s5 + $0x40] sm:$0xff]   ;;  %v3026_v56 = vld [vmem:[#allocation4 + $0x1f4] ss:$8 sps:$4 sm:$0xff]  }
  0xdc   :  { %1517 = vmatpush1.bf16.msra.mxu1 %v2871_v60  ;;  %v259_v58 = vsub.s32 0, %v3204_v57  ;;  %v263_v60 = vsub.s32 1, %v3204_v57 }
  0xdd   :  { %1518 = vmatprep.subr.bf16.mxu1 %v2876_v62  ;;  %2034 = vmatpush1.bf16.msra.mxu0 %v2955_v1  ;;  %v3029_v1 = vld [vmem:[%s3295_s5 + $0x48] sm:$0xff]  }
  0xde   :  { %2035 = vmatprep.subr.bf16.mxu0 %v2960_v3  ;;  %v264_v61 = vrot.slane %v3210_v59, %v263_v60 }
  0xe0   :  { %1519 = vmatpush1.bf16.msra.mxu1 %v2874_v0  ;;  %v3028_v0 = vld [vmem:[%s3295_s5] sm:$0xff]  }
  0xe1   :  { %1520 = vmatprep.subr.bf16.mxu1 %v2879_v2  ;;  %2036 = vmatpush1.bf16.msra.mxu0 %v2958_v5 }
  0xe2   :  { %2037 = vmatprep.subr.bf16.mxu0 %v2963_v9 }
  0xe4   :  { %1521 = vmatpush1.bf16.msra.mxu1 %v2877_v4 }
  0xe5   :  { %1531 = vmatprep.subr.bf16.mxu1 %v2882_v8  ;;  %2038 = vmatpush1.bf16.msra.mxu0 %v2961_v12 }
  0xe6   :  { %2039 = vmatprep.subr.bf16.mxu0 %v2966_v14  ;;  %v3031_v14 = vld [vmem:[%s3295_s5 + $0x50] sm:$0xff]  }
  0xe7   :  { %1523 = vmatmul.mubr.bf16.vlgmr.msra.gmra.mrb[4].mxu1 %v3176_v7  ;;  %v2889_v7 = vld [vmem:[#allocation2 + $0x468] ss:$16 sps:$4 sm:$0xff]  }
  0xe8   :  { %1532 = vmatpush1.bf16.msra.mxu1 %v2880_v10  ;;  %1563 = vmatprep.mubr.bf16.mxu1 %v3188_v34  ;;  %v2970_v34 = vld [vmem:[#allocation4 + $0xd0] ss:$8 sps:$4 sm:$0xff]   ;;  %v3030_v10 = vld [vmem:[%s3295_s5 + $0x8] sm:$0xff]  }
  0xe9   :  { %1533 = vmatprep.subr.bf16.mxu1 %v2885_v11  ;;  %2040 = vmatpush1.bf16.msra.mxu0 %v2964_v17  ;;  %v2979_v17 = vld [vmem:[#allocation4 + $0x100] ss:$8 sps:$4 sm:$0xff]  }
  0xea   :  { %2041 = vmatprep.subr.bf16.mxu0 %v2969_v18  ;;  %v3032_v18 = vld [vmem:[%s3295_s5 + $0x10] sm:$0xff]  }
  0xec   :  { %1534 = vmatpush1.bf16.msra.mxu1 %v2883_v15 }
  0xed   :  { %1535 = vmatprep.subr.bf16.mxu1 %v2888_v16  ;;  %2042 = vmatpush1.bf16.msra.mxu0 %v2967_v21  ;;  %v3033_v21 = vld [vmem:[%s3295_s5 + $0x58] sm:$0xff]  }
  0xee   :  { %2043 = vmatprep.subr.bf16.mxu0 %v2972_v22 }
  0xf0   :  { %1536 = vmatpush1.bf16.msra.mxu1 %v2886_v19 }
  0xf1   :  { %1537 = vmatprep.subr.bf16.mxu1 %v2891_v20  ;;  %2044 = vmatpush1.bf16.msra.mxu0 %v2970_v34  ;;  %v2984_v20 = vld [vmem:[#allocation4 + $0x114] ss:$8 sps:$4 sm:$0xff]  }
  0xf2   :  { %2045 = vmatprep.subr.bf16.mxu0 %v2975_v32  ;;  %v2993_v32 = vld [vmem:[#allocation4 + $0x144] ss:$8 sps:$4 sm:$0xff]  }
  0xf4   :  { %1538 = vmatpush1.bf16.msra.mxu1 %v2889_v7 }
  0xf5   :  { %1539 = vmatprep.subr.bf16.mxu1 %v2894_v23  ;;  %2046 = vmatpush1.bf16.msra.mxu0 %v2973_v33  ;;  %v2982_v23 = vld [vmem:[#allocation4 + $0x110] ss:$8 sps:$4 sm:$0xff]   ;;  %v2991_v33 = vld [vmem:[#allocation4 + $0x140] ss:$8 sps:$4 sm:$0xff]  }
  0xf6   :  { %2047 = vmatprep.subr.bf16.mxu0 %v2978_v37  ;;  %v2999_v37 = vld [vmem:[#allocation4 + $0x164] ss:$8 sps:$4 sm:$0xff]  }
  0xf8   :  { %1540 = vmatpush1.bf16.msra.mxu1 %v2892_v24  ;;  %v3034_v24 = vld [vmem:[%s3295_s5 + $0x18] sm:$0xff]  }
  0xf9   :  { %1541 = vmatprep.subr.bf16.mxu1 %v2897_v6  ;;  %2048 = vmatpush1.bf16.msra.mxu0 %v2976_v38  ;;  %v2987_v6 = vld [vmem:[#allocation4 + $0x124] ss:$8 sps:$4 sm:$0xff]   ;;  %v2997_v38 = vld [vmem:[#allocation4 + $0x160] ss:$8 sps:$4 sm:$0xff]  }
  0xfa   :  { %2058 = vmatprep.subr.bf16.mxu0 %v2981_v41  ;;  %v3005_v41 = vld [vmem:[#allocation4 + $0x184] ss:$8 sps:$4 sm:$0xff]  }
  0xfc   :  { %1542 = vmatpush1.bf16.msra.mxu1 %v2895_v25 }
  0xfd   :  { %1543 = vmatprep.subr.bf16.mxu1 %v2900_v26  ;;  %v3035_v26 = vld [vmem:[%s3295_s5 + $0x60] sm:$0xff]  }
 0x100   :  { %1544 = vmatpush1.bf16.msra.mxu1 %v2898_v27  ;;  %v2985_v27 = vld [vmem:[#allocation4 + $0x120] ss:$8 sps:$4 sm:$0xff]  }
 0x101   :  { %1545 = vmatprep.subr.bf16.mxu1 %v2903_v51  ;;  %v3036_v51 = vld [vmem:[%s3295_s5 + $0x20] sm:$0xff]  }
 0x104   :  { %1546 = vmatpush1.bf16.msra.mxu1 %v2901_v28  ;;  %v2990_v28 = vld [vmem:[#allocation4 + $0x134] ss:$8 sps:$4 sm:$0xff]  }
 0x105   :  { %1547 = vmatprep.subr.bf16.mxu1 %v2906_v29  ;;  %v3037_v29 = vld [vmem:[%s3295_s5 + $0x68] sm:$0xff]  }
 0x108   :  { %1548 = vmatpush1.bf16.msra.mxu1 %v2904_v30  ;;  %v2988_v30 = vld [vmem:[#allocation4 + $0x130] ss:$8 sps:$4 sm:$0xff]  }
 0x109   :  { %1549 = vmatprep.subr.bf16.mxu1 %v2909_v31  ;;  %v3038_v31 = vld [vmem:[%s3295_s5 + $0x28] sm:$0xff]  }
 0x10c   :  { %1550 = vmatpush1.bf16.msra.mxu1 %v2907_v35  ;;  %v2996_v35 = vld [vmem:[#allocation4 + $0x154] ss:$8 sps:$4 sm:$0xff]  }
 0x10d   :  { %1551 = vmatprep.subr.bf16.mxu1 %v2912_v36  ;;  %v2994_v36 = vld [vmem:[#allocation4 + $0x150] ss:$8 sps:$4 sm:$0xff]  }
 0x110   :  { %1552 = vmatpush1.bf16.msra.mxu1 %v2910_v39  ;;  %v3002_v39 = vld [vmem:[#allocation4 + $0x174] ss:$8 sps:$4 sm:$0xff]  }
 0x111   :  { %1553 = vmatprep.subr.bf16.mxu1 %v2915_v40  ;;  %v3000_v40 = vld [vmem:[#allocation4 + $0x170] ss:$8 sps:$4 sm:$0xff]  }
 0x114   :  { %1554 = vmatpush1.bf16.msra.mxu1 %v2913_v42  ;;  %v3003_v42 = vld [vmem:[#allocation4 + $0x180] ss:$8 sps:$4 sm:$0xff]  }
 0x115   :  { %1555 = vmatprep.subr.bf16.mxu1 %v2918_v43  ;;  %v3008_v43 = vld [vmem:[#allocation4 + $0x194] ss:$8 sps:$4 sm:$0xff]  }
 0x118   :  { %1556 = vmatpush1.bf16.msra.mxu1 %v2916_v44  ;;  %v3006_v44 = vld [vmem:[#allocation4 + $0x190] ss:$8 sps:$4 sm:$0xff]  }
 0x119   :  { %1557 = vmatprep.subr.bf16.mxu1 %v2921_v45  ;;  %v3011_v45 = vld [vmem:[#allocation4 + $0x1a4] ss:$8 sps:$4 sm:$0xff]  }
 0x11c   :  { %1558 = vmatpush1.bf16.msra.mxu1 %v2919_v46  ;;  %v3009_v46 = vld [vmem:[#allocation4 + $0x1a0] ss:$8 sps:$4 sm:$0xff]  }
 0x11d   :  { %1559 = vmatprep.subr.bf16.mxu1 %v2924_v47  ;;  %v3014_v47 = vld [vmem:[#allocation4 + $0x1b4] ss:$8 sps:$4 sm:$0xff]  }
 0x120   :  { %1560 = vmatpush1.bf16.msra.mxu1 %v2922_v48  ;;  %v3012_v48 = vld [vmem:[#allocation4 + $0x1b0] ss:$8 sps:$4 sm:$0xff]  }
 0x121   :  { %1561 = vmatprep.subr.bf16.mxu1 %v2930_v49  ;;  %v3017_v49 = vld [vmem:[#allocation4 + $0x1c4] ss:$8 sps:$4 sm:$0xff]  }
 0x124   :  { %1562 = vmatpush1.bf16.msra.mxu1 %v2928_v50  ;;  %v3015_v50 = vld [vmem:[#allocation4 + $0x1c0] ss:$8 sps:$4 sm:$0xff]  }
 0x125   :  { %2571 = vmatprep.subr.bf16.mxu1 %v3027_v63 }
 0x127   :  { %1564 = vmatmul.mubr.bf16.vlgmr.msra.gmra.mrb[4].mxu1 %v3193_v13  ;;  %v260_v13 = vrot.slane %v3210_v59, %v259_v58 }
 0x128   :  { %2572 = vmatpush3.bf16.msra.mxu1 %v3028_v0 }
 0x129   :  { %2573 = vmatprep.subr.bf16.mxu1 %v3029_v1 }
 0x12c   :  { %2574 = vmatpush3.bf16.msra.mxu1 %v3030_v10 }
 0x12d   :  { %2575 = vmatprep.subr.bf16.mxu1 %v3031_v14 }
 0x130   :  { %2576 = vmatpush3.bf16.msra.mxu1 %v3032_v18  ;;  %v3042_v18 = vld [vmem:[%s3295_s5 + $0x38] sm:$0xff]  }
 0x131   :  { %2577 = vmatprep.subr.bf16.mxu1 %v3033_v21 }
 0x134   :  { %2578 = vmatpush3.bf16.msra.mxu1 %v3034_v24 }
 0x135   :  { %2579 = vmatprep.subr.bf16.mxu1 %v3035_v26 }
 0x138   :  { %2580 = vmatpush3.bf16.msra.mxu1 %v3036_v51 }
 0x139   :  { %2581 = vmatprep.subr.bf16.mxu1 %v3037_v29 }
 0x13a   :  { %v1319_v52 = vpop.f32.mrb[0].mxu1 }
 0x13b   :  { %v1321_v53 = vpop.f32.mrb[1].mxu1  ;;  %v1320_v62 = vadd.f32 %v1319_v52, %v260_v13  ;;  %v3020_v52 = vld [vmem:[#allocation4 + $0x1d4] ss:$8 sps:$4 sm:$0xff]   ;;  %v3024_v13 = vld [vmem:[#allocation4 + $0x1f0] ss:$8 sps:$4 sm:$0xff]  }
 0x13c   :  { %v1323_v54 = vpop.f32.mrb[2].mxu1  ;;  %v1322_v2 = vadd.f32 %v1321_v53, %v264_v61  ;;  %2582 = vmatpush3.bf16.msra.mxu1 %v3038_v31  ;;  %v3018_v53 = vld [vmem:[#allocation4 + $0x1d0] ss:$8 sps:$4 sm:$0xff]   ;;  %v267_v61 = vsub.s32 2, %v3204_v57 }
 0x13d   :  { %v1324_v55 = vpop.f32.mrb[3].mxu1  ;;  %v3023_v54 = vld [vmem:[#allocation4 + $0x1e4] ss:$8 sps:$4 sm:$0xff]  }
 0x13e   :  { %v3021_v55 = vld [vmem:[#allocation4 + $0x1e0] ss:$8 sps:$4 sm:$0xff]   ;;  %v268_v63 = vrot.slane %v3210_v59, %v267_v61 }
 0x187   :  { %v1442_v3 = vpop.f32.mrb[0].mxu0 }
 0x188   :  { %v2594_v4 = vadd.f32 %v1442_v3, %v1320_v62  ;;  %v1444_v5 = vpop.f32.mrb[1].mxu0  ;;  %v271_v62 = vsub.s32 3, %v3204_v57 }
 0x189   :  { %v2596_v8 = vadd.f32 %v1444_v5, %v1322_v2  ;;  %v1446_v9 = vpop.f32.mrb[2].mxu0 }
 0x18a   :  { %v1613_v11 = vmax.f32 %v2594_v4, 0.0  ;;  %v1447_v12 = vpop.f32.mrb[3].mxu0  ;;  %v272_v0 = vrot.slane %v3210_v59, %v271_v62  ;;  %v3039_v59 = vld [vmem:[%s3295_s5 + $0x70] sm:$0xff]  }
 0x18b   :  { %v1614_v15 = vmax.f32 %v2596_v8, 0.0  ;;  %2583 = vmatprep.subr.bf16.mxu1 %v3039_v59 }
 0x18c   :  { %v1617_v19 = vpack.c.bf16 %v1613_v11, %v1613_v11 }
 0x18d   :  { %v1618_v16 = vpack.c.bf16 %v1614_v15, %v1614_v15 }
 0x18f   :  { %2049 = vmatprep.mubr.bf16.mxu0 %v1618_v16  ;;  %v3240_v22 = vpop.f32.mrb[4].mxu0  ;;  %v3040_v16 = vld [vmem:[%s3295_s5 + $0x30] sm:$0xff]  }
 0x190   :  { %2050 = vmatmul.mubr.bf16.vlgmr.msra.gmra.mrb[8].mxu0 %v1617_v19  ;;  %v3242_v7 = vpop.f32.mrb[5].mxu0  ;;  %2584 = vmatpush3.bf16.msra.mxu1 %v3040_v16  ;;  %v1685_v19 = vld [vmem:[%s3294_s4] sm:$0x3] }
 0x191   :  { %2059 = vmatpush1.bf16.msra.mxu0 %v2979_v17  ;;  %v1610_v34 = vpop.f32.mrb[6].mxu0  ;;  %v3041_v17 = vld [vmem:[%s3295_s5 + $0x78] sm:$0xff]   ;;  %v1694_v21 = vrot.slane %v1685_v19, %v263_v60 }
 0x192   :  { %2060 = vmatprep.subr.bf16.mxu0 %v2984_v20  ;;  %v1611_v25 = vpop.f32.mrb[7].mxu0  ;;  %2585 = vmatprep.subr.bf16.mxu1 %v3041_v17  ;;  %v1690_v20 = vrot.slane %v1685_v19, %v259_v58  ;;  %v2554_v58 = vld [vmem:[%s3296_s6] ss:$0 sm:$0xff] }
 0x194   :  { %2586 = vmatpush3.bf16.msra.mxu1 %v3042_v18 }
 0x195   :  { %2061 = vmatpush1.bf16.msra.mxu0 %v2982_v23 }
 0x196   :  { %2062 = vmatprep.subr.bf16.mxu0 %v2987_v6 }
 0x199   :  { %2063 = vmatpush1.bf16.msra.mxu0 %v2985_v27 }
 0x19a   :  { %2064 = vmatprep.subr.bf16.mxu0 %v2990_v28 }
 0x19d   :  { %2065 = vmatpush1.bf16.msra.mxu0 %v2988_v30 }
 0x19e   :  { %2066 = vmatprep.subr.bf16.mxu0 %v2993_v32 }
 0x1a1   :  { %2067 = vmatpush1.bf16.msra.mxu0 %v2991_v33 }
 0x1a2   :  { %2068 = vmatprep.subr.bf16.mxu0 %v2996_v35 }
 0x1a5   :  { %2069 = vmatpush1.bf16.msra.mxu0 %v2994_v36 }
 0x1a6   :  { %2070 = vmatprep.subr.bf16.mxu0 %v2999_v37 }
 0x1a9   :  { %2071 = vmatpush1.bf16.msra.mxu0 %v2997_v38 }
 0x1aa   :  { %2072 = vmatprep.subr.bf16.mxu0 %v3002_v39 }
 0x1ad   :  { %2073 = vmatpush1.bf16.msra.mxu0 %v3000_v40 }
 0x1ae   :  { %2074 = vmatprep.subr.bf16.mxu0 %v3005_v41 }
 0x1b1   :  { %2075 = vmatpush1.bf16.msra.mxu0 %v3003_v42 }
 0x1b2   :  { %2076 = vmatprep.subr.bf16.mxu0 %v3008_v43 }
 0x1b5   :  { %2077 = vmatpush1.bf16.msra.mxu0 %v3006_v44 }
 0x1b6   :  { %2078 = vmatprep.subr.bf16.mxu0 %v3011_v45 }
 0x1b9   :  { %2079 = vmatpush1.bf16.msra.mxu0 %v3009_v46 }
 0x1ba   :  { %2080 = vmatprep.subr.bf16.mxu0 %v3014_v47 }
 0x1bd   :  { %2081 = vmatpush1.bf16.msra.mxu0 %v3012_v48 }
 0x1be   :  { %2082 = vmatprep.subr.bf16.mxu0 %v3017_v49 }
 0x1c1   :  { %2083 = vmatpush1.bf16.msra.mxu0 %v3015_v50 }
 0x1c2   :  { %2084 = vmatprep.subr.bf16.mxu0 %v3020_v52 }
 0x1c5   :  { %2085 = vmatpush1.bf16.msra.mxu0 %v3018_v53 }
 0x1c6   :  { %2086 = vmatprep.subr.bf16.mxu0 %v3023_v54 }
 0x1c9   :  { %2087 = vmatpush1.bf16.msra.mxu0 %v3021_v55 }
 0x1ca   :  { %2088 = vmatprep.subr.bf16.mxu0 %v3026_v56 }
 0x1cd   :  { %2089 = vmatpush1.bf16.msra.mxu0 %v3024_v13 }
 0x1fa   :  { %v1565_v1 = vpop.f32.mrb[4].mxu1 }
 0x1fb   :  { %v2597_v2 = vadd.f32 %v1565_v1, %v268_v63  ;;  %v1567_v3 = vpop.f32.mrb[5].mxu1 }
 0x1fc   :  { %v2599_v4 = vadd.f32 %v1567_v3, %v272_v0  ;;  %v1569_v5 = vpop.f32.mrb[6].mxu1 }
 0x1fd   :  { %v2598_v8 = vadd.f32 %v2597_v2, %v3240_v22  ;;  %v1570_v9 = vpop.f32.mrb[7].mxu1 }
 0x1fe   :  { %v2600_v10 = vadd.f32 %v2599_v4, %v3242_v7 }
 0x1ff   :  { %v1615_v11 = vmax.f32 %v2598_v8, 0.0 }
 0x200   :  { %v1616_v12 = vmax.f32 %v2600_v10, 0.0 }
 0x201   :  { %v1619_v15 = vpack.c.bf16 %v1615_v11, %v1615_v11 }
 0x202   :  { %v1620_v14 = vpack.c.bf16 %v1616_v12, %v1616_v12 }
 0x204   :  { %2090 = vmatprep.mubr.bf16.mxu0 %v1620_v14 }
 0x205   :  { %2091 = vmatmul.mubr.bf16.vlgmr.msra.gmra.mrb[8].mxu0 %v1619_v15 }
 0x2d8   :  { %v2092_v22 = vpop.f32.mrb[8].mxu0 }
 0x2d9   :  { %v2601_v7 = vadd.f32 %v2092_v22, %v1690_v20  ;;  %v2094_v23 = vpop.f32.mrb[9].mxu0 }
 0x2da   :  { %v2602_v34 = vadd.f32 %v2094_v23, %v1694_v21  ;;  %v2096_v24 = vpop.f32.mrb[10].mxu0 }
 0x2db   :  { %v2099_v6 = vmax.f32 %v2601_v7, 0.0  ;;  %v2097_v25 = vpop.f32.mrb[11].mxu0 }
 0x2dc   :  { %v2100_v26 = vmax.f32 %v2602_v34, 0.0 }
 0x2dd   :  { %v2101_v51 = vpack.c.bf16 %v2099_v6, %v2099_v6 }
 0x2de   :  { %v2102_v27 = vpack.c.bf16 %v2100_v26, %v2100_v26 }
 0x2e0   :  { %2270 = vmatprep.mubr.bf16.mxu1 %v2102_v27 }
 0x2e1   :  { %2271 = vmatmul.mubr.bf16.vlgmr.msra.gmra.mrb[8].mxu1 %v2101_v51 }
 0x3b4   :  { %v2587_v28 = vpop.f32.mrb[8].mxu1 }
 0x3b5   :  { %v2588_v29 = vpop.f32.mrb[9].mxu1 }
 0x3b6   :  { %v2589_v57 = vadd.f32 %v2588_v29, %v2587_v28  ;;  %v2590_v60 = vpop.f32.mrb[10].mxu1 }
 0x3b7   :  { %v2591_v30 = vpop.f32.mrb[11].mxu1 }
 0x3b8   :  { %v2273_v31 = vadd.f32 %v2589_v57, %v2554_v58 }
 0x3ba   :  { %2278 = vst [vmem:[%s3297_s7] sm:$0xff] %v2273_v31 }
 0x3bb   :  { %2283 = vsyncpa [#allocation3], 1 }
 0x3bc   :  { %2284 = vsyncpa [#allocation5], 1 }

</bundles_post_ra>
